<compile_context>
chip_gen: v6e
topology: v6e:2x2x1
jax: 0.10.0
libtpu: 0.0.40
codegen_flags: <defaults>
</compile_context>

<pallas_src>
import jax
import jax.numpy as jnp
from jax.experimental import pallas as pl
from jax.experimental.pallas import tpu as pltpu

_LANE = 128     # lane width: every gate block is aligned to this
_SUBLANE = 8    # f32 sublane tile


def _round_up(x, m):
    return ((x + m - 1) // m) * m


def _compiler_params(weight_bytes, dims=None):
    """Raise scoped VMEM only when the double-buffered weights need it."""
    limit = None
    if 2 * weight_bytes > 12 * (1 << 20):          # nearing v5e's 16 MiB default
        limit = min(int(2.5 * weight_bytes) + (8 << 20), 56 * (1 << 20))
    return pltpu.CompilerParams(dimension_semantics=dims, vmem_limit_bytes=limit)


# ---------------------------------------------------------------------------
# Kernels
# ---------------------------------------------------------------------------

def _gru_step_kernel(x_ref, h_ref, wx_ref, wh_ref, b_rzn_ref, b_hn_ref, out_ref):
    """Single GRU step, fully in VMEM.

    x_ref    : (Bp, Hp)   f32   input x_t
    h_ref    : (Bp, Hp)   f32   previous hidden state (aliased with out_ref)
    wx_ref   : (Hp, 3*Hp) bf16  input weights, cols [r | z | i_n]
    wh_ref   : (Hp, 3*Hp) bf16  hidden weights, cols [r | z | h_n]
    b_rzn_ref: (1, 3*Hp)  f32   [b_ir+b_hr | b_iz+b_hz | b_in]
    b_hn_ref : (1, Hp)    f32   b_hn (must stay inside r * (.))
    out_ref  : (Bp, Hp)   f32   new hidden state h'
    """
    Hp = out_ref.shape[-1]
    h = h_ref[...]                                   # f32, read before aliased write

    # Two MXU pushes (no zero-padded gate blocks), f32 accumulation.
    gx = jnp.dot(x_ref[...].astype(jnp.bfloat16), wx_ref[...],
                 preferred_element_type=jnp.float32)
    gh = jnp.dot(h.astype(jnp.bfloat16), wh_ref[...],
                 preferred_element_type=jnp.float32)

    # Gate slices start at multiples of Hp (a multiple of 128) -> lane-aligned
    # zero-cost views; all elementwise math in f32 (v5e has no bf16 VPU).
    r = jax.nn.sigmoid(gx[:, 0:Hp] + gh[:, 0:Hp] + b_rzn_ref[:, 0:Hp])
    z = jax.nn.sigmoid(gx[:, Hp:2 * Hp] + gh[:, Hp:2 * Hp] + b_rzn_ref[:, Hp:2 * Hp])
    n = jnp.tanh(gx[:, 2 * Hp:3 * Hp] + b_rzn_ref[:, 2 * Hp:3 * Hp]
                 + r * (gh[:, 2 * Hp:3 * Hp] + b_hn_ref[...]))

    # h' = (1 - z) * n + z * h  ==  n + z * (h - n)
    out_ref[...] = n + z * (h - n)


def _gru_seq_kernel(x_ref, wx_ref, wh_ref, b_rzn_ref, b_hn_ref, h0_ref,
                    out_ref, hcar_ref):
    """T-step GRU: grid over time, weights VMEM-resident, h carried in scratch.

    x_ref   : (1, Bp, Hp) f32   x_t block for this grid step
    h0_ref  : (Bp, Hp)    f32   initial hidden state (DMAed once)
    out_ref : (1, Bp, Hp) f32   h_t for this step
    hcar_ref: (Bp, Hp)    f32   VMEM scratch carrying h across grid steps
    """
    Hp = hcar_ref.shape[-1]
    t = pl.program_id(0)

    @pl.when(t == 0)
    def _():
        hcar_ref[...] = h0_ref[...]

    h = hcar_ref[...]
    gx = jnp.dot(x_ref[0].astype(jnp.bfloat16), wx_ref[...],
                 preferred_element_type=jnp.float32)
    gh = jnp.dot(h.astype(jnp.bfloat16), wh_ref[...],
                 preferred_element_type=jnp.float32)

    r = jax.nn.sigmoid(gx[:, 0:Hp] + gh[:, 0:Hp] + b_rzn_ref[:, 0:Hp])
    z = jax.nn.sigmoid(gx[:, Hp:2 * Hp] + gh[:, Hp:2 * Hp] + b_rzn_ref[:, Hp:2 * Hp])
    n = jnp.tanh(gx[:, 2 * Hp:3 * Hp] + b_rzn_ref[:, 2 * Hp:3 * Hp]
                 + r * (gh[:, 2 * Hp:3 * Hp] + b_hn_ref[...]))

    h_new = n + z * (h - n)
    hcar_ref[...] = h_new
    out_ref[...] = h_new[None, :, :]


# ---------------------------------------------------------------------------
# pallas_call wrappers
# ---------------------------------------------------------------------------

def _gru_step_pallas(x, h_prev, params):
    """x, h_prev: (Bp, Hp) f32.  Returns (Bp, Hp) f32 new hidden state."""
    Bp, Hp = x.shape
    w_x, w_h = params["w_x"], params["w_h"]
    w_bytes = (w_x.size + w_h.size) * 2  # bf16

    flops = 2 * 2 * Bp * Hp * (3 * Hp)
    bytes_accessed = (2 * Bp * Hp * 4 + w_bytes
                      + params["b_rzn"].size * 4 + params["b_hn"].size * 4
                      + Bp * Hp * 4)

    return pl.pallas_call(
        _gru_step_kernel,
        out_shape=jax.ShapeDtypeStruct((Bp, Hp), jnp.float32),
        in_specs=[
            pl.BlockSpec((Bp, Hp), lambda: (0, 0)),          # x
            pl.BlockSpec((Bp, Hp), lambda: (0, 0)),          # h_prev
            pl.BlockSpec((Hp, 3 * Hp), lambda: (0, 0)),      # W_x
            pl.BlockSpec((Hp, 3 * Hp), lambda: (0, 0)),      # W_h
            pl.BlockSpec((1, 3 * Hp), lambda: (0, 0)),       # b_rzn
            pl.BlockSpec((1, Hp), lambda: (0, 0)),           # b_hn
        ],
        out_specs=pl.BlockSpec((Bp, Hp), lambda: (0, 0)),
        input_output_aliases={1: 0},                         # h' overwrites h_prev
        cost_estimate=pl.CostEstimate(flops=flops,
                                      transcendentals=3 * Bp * Hp,
                                      bytes_accessed=bytes_accessed),
        compiler_params=_compiler_params(w_bytes),
    )(x, h_prev, w_x, w_h, params["b_rzn"], params["b_hn"])


def _gru_seq_pallas(x_seq, h0, params):
    """x_seq: (T, Bp, Hp) f32; h0: (Bp, Hp) f32.  Returns (T, Bp, Hp) f32."""
    T, Bp, Hp = x_seq.shape
    w_x, w_h = params["w_x"], params["w_h"]
    w_bytes = (w_x.size + w_h.size) * 2  # bf16

    flops = T * 2 * 2 * Bp * Hp * (3 * Hp)
    bytes_accessed = (2 * T * Bp * Hp * 4 + w_bytes + Bp * Hp * 4
                      + params["b_rzn"].size * 4 + params["b_hn"].size * 4)

    return pl.pallas_call(
        _gru_seq_kernel,
        out_shape=jax.ShapeDtypeStruct((T, Bp, Hp), jnp.float32),
        grid=(T,),
        in_specs=[
            pl.BlockSpec((1, Bp, Hp), lambda t: (t, 0, 0)),      # x_t (streamed)
            pl.BlockSpec((Hp, 3 * Hp), lambda t: (0, 0)),        # W_x (resident)
            pl.BlockSpec((Hp, 3 * Hp), lambda t: (0, 0)),        # W_h (resident)
            pl.BlockSpec((1, 3 * Hp), lambda t: (0, 0)),         # b_rzn (resident)
            pl.BlockSpec((1, Hp), lambda t: (0, 0)),             # b_hn (resident)
            pl.BlockSpec((Bp, Hp), lambda t: (0, 0)),            # h0 (resident)
        ],
        out_specs=pl.BlockSpec((1, Bp, Hp), lambda t: (t, 0, 0)),
        scratch_shapes=[pltpu.VMEM((Bp, Hp), jnp.float32)],      # h carry
        cost_estimate=pl.CostEstimate(flops=flops,
                                      transcendentals=3 * T * Bp * Hp,
                                      bytes_accessed=bytes_accessed),
        compiler_params=_compiler_params(w_bytes, dims=("arbitrary",)),
    )(x_seq, w_x, w_h, params["b_rzn"], params["b_hn"], h0)


# ---------------------------------------------------------------------------
# Parameter packing & module-level wrappers
# ---------------------------------------------------------------------------

def pack_gru_params(w_ih, w_hh, b_ih, b_hh):
    """PyTorch-layout GRU params -> split, lane-aligned Pallas layout.

    w_ih, w_hh : (3H, H)   rows are gates in order [r | z | n]
    b_ih, b_hh : (3H,)
    """
    H = w_ih.shape[1]
    Hp = _round_up(H, _LANE)

    # W_x columns [r | z | i_n]; W_h columns [r | z | h_n].  Each gate block
    # starts at a multiple of Hp (lane-aligned); no all-zero gate blocks.
    w_x = jnp.zeros((Hp, 3 * Hp), jnp.float32)
    w_x = w_x.at[0:H, 0:H].set(w_ih[0:H].T)
    w_x = w_x.at[0:H, Hp:Hp + H].set(w_ih[H:2 * H].T)
    w_x = w_x.at[0:H, 2 * Hp:2 * Hp + H].set(w_ih[2 * H:3 * H].T)

    w_h = jnp.zeros((Hp, 3 * Hp), jnp.float32)
    w_h = w_h.at[0:H, 0:H].set(w_hh[0:H].T)
    w_h = w_h.at[0:H, Hp:Hp + H].set(w_hh[H:2 * H].T)
    w_h = w_h.at[0:H, 2 * Hp:2 * Hp + H].set(w_hh[2 * H:3 * H].T)

    # Pre-summed biases for r/z, b_in for n; b_hn stays separate (inside r*()).
    b_rzn = jnp.zeros((1, 3 * Hp), jnp.float32)
    b_rzn = b_rzn.at[0, 0:H].set(b_ih[0:H] + b_hh[0:H])
    b_rzn = b_rzn.at[0, Hp:Hp + H].set(b_ih[H:2 * H] + b_hh[H:2 * H])
    b_rzn = b_rzn.at[0, 2 * Hp:2 * Hp + H].set(b_ih[2 * H:3 * H])

    b_hn = jnp.zeros((1, Hp), jnp.float32).at[0, 0:H].set(b_hh[2 * H:3 * H])

    return {
        "w_x": w_x.astype(jnp.bfloat16),   # bf16 into the MXU, f32 accumulate
        "w_h": w_h.astype(jnp.bfloat16),
        "b_rzn": b_rzn,                    # f32
        "b_hn": b_hn,                      # f32
        "d_hid": H,
        "d_hid_padded": Hp,
    }


def _pad_bh(a, B, H, Bp, Hp):
    return jnp.pad(a.reshape(B, H).astype(jnp.float32),
                   ((0, Bp - B), (0, Hp - H)))


def word_decoder_forward(tgts, hid_word_dec, params):
    """Pallas equivalent of Word_Decoder.forward (single decode step).

    tgts         : (batch, 1, d_hid)
    hid_word_dec : (batch, 1, d_hid)
    returns (out, h): out = (batch, 1, d_hid), h = (1, batch, d_hid)
    (matches PyTorch nn.GRU(batch_first=True), num_layers = 1).
    """
    B, T, H = tgts.shape
    assert T == 1, "Word_Decoder decodes a single step"
    assert H == params["d_hid"]
    Hp = params["d_hid_padded"]
    Bp = max(_round_up(B, _SUBLANE), _SUBLANE)

    x = _pad_bh(tgts, B, H, Bp, Hp)
    # PyTorch: h = hid_word_dec.transpose(1, 0) -> (1, B, H); the cell sees (B, H).
    h0 = _pad_bh(hid_word_dec, B, H, Bp, Hp)

    h_new = _gru_step_pallas(x, h0, params)[:B, :H]
    return h_new.reshape(B, 1, H), h_new.reshape(1, B, H)


def word_decoder_decode_sequence(tgt_seq, hid_word_dec, params):
    """Teacher-forced T-step decode loop with VMEM-resident weights.

    tgt_seq      : (batch, T, d_hid)
    hid_word_dec : (batch, 1, d_hid)
    returns (out, h): out = (batch, T, d_hid) per-step hiddens,
                      h   = (1, batch, d_hid) final hidden state.
    """
    B, T, H = tgt_seq.shape
    assert H == params["d_hid"]
    Hp = params["d_hid_padded"]
    Bp = max(_round_up(B, _SUBLANE), _SUBLANE)

    x_seq = jnp.swapaxes(tgt_seq.astype(jnp.float32), 0, 1)      # (T, B, H)
    x_seq = jnp.pad(x_seq, ((0, 0), (0, Bp - B), (0, Hp - H)))
    h0 = _pad_bh(hid_word_dec, B, H, Bp, Hp)

    hs = _gru_seq_pallas(x_seq, h0, params)                      # (T, Bp, Hp)
    hs = hs[:, :B, :H]
    out = jnp.swapaxes(hs, 0, 1)                                 # (B, T, H)
    h_last = hs[-1].reshape(1, B, H)
    return out, h_last


def init_gru_params(key, d_hid):
    """Deterministic GRU parameters in PyTorch layout, then packed for Pallas."""
    k1, k2, k3, k4 = jax.random.split(key, 4)
    scale = 1.0 / jnp.sqrt(d_hid)
    w_ih = jax.random.uniform(k1, (3 * d_hid, d_hid), jnp.float32, -scale, scale)
    w_hh = jax.random.uniform(k2, (3 * d_hid, d_hid), jnp.float32, -scale, scale)
    b_ih = jax.random.uniform(k3, (3 * d_hid,), jnp.float32, -scale, scale)
    b_hh = jax.random.uniform(k4, (3 * d_hid,), jnp.float32, -scale, scale)
    packed = pack_gru_params(w_ih, w_hh, b_ih, b_hh)
    packed["_raw"] = (w_ih, w_hh, b_ih, b_hh)   # kept only for the reference check
    return packed


def _reference_gru_cell(x, h, w_ih, w_hh, b_ih, b_hh):
    """Pure-JAX f32 GRU cell, PyTorch gate order [r | z | n]."""
    H = x.shape[-1]
    gi = x @ w_ih.T + b_ih
    gh = h @ w_hh.T + b_hh
    r = jax.nn.sigmoid(gi[:, :H] + gh[:, :H])
    z = jax.nn.sigmoid(gi[:, H:2 * H] + gh[:, H:2 * H])
    n = jnp.tanh(gi[:, 2 * H:] + r * gh[:, 2 * H:])
    return (1.0 - z) * n + z * h


if __name__ == "__main__":
    batch = 4
    d_hid = 32
    T = 6

    key = jax.random.PRNGKey(0)
    k_param, k_tgt, k_hid, k_seq = jax.random.split(key, 4)

    params = init_gru_params(k_param, d_hid)
    tgts = jax.random.normal(k_tgt, (batch, 1, d_hid), dtype=jnp.float32)
    hid_word_dec = jax.random.normal(k_hid, (batch, 1, d_hid), dtype=jnp.float32)
    w_ih, w_hh, b_ih, b_hh = params["_raw"]

    # ---- single decode step (the Word_Decoder.forward contract) ------------
    out, h = word_decoder_forward(tgts, hid_word_dec, params)
    out = jax.block_until_ready(out)
    h = jax.block_until_ready(h)

    ref = _reference_gru_cell(tgts.reshape(batch, d_hid),
                              hid_word_dec.reshape(batch, d_hid),
                              w_ih, w_hh, b_ih, b_hh)
    assert out.shape == (batch, 1, d_hid)
    assert h.shape == (1, batch, d_hid)
    # bf16 matmuls with f32 accumulation -> loosened tolerance.
    assert jnp.allclose(out.reshape(batch, d_hid), ref, atol=1e-2, rtol=1e-2), (
        float(jnp.max(jnp.abs(out.reshape(batch, d_hid) - ref))))
    assert jnp.allclose(h.reshape(batch, d_hid), ref, atol=1e-2, rtol=1e-2)

    # ---- multi-step decode loop (weights VMEM-resident across T steps) -----
    tgt_seq = jax.random.normal(k_seq, (batch, T, d_hid), dtype=jnp.float32)
    out_seq, h_last = word_decoder_decode_sequence(tgt_seq, hid_word_dec, params)
    out_seq = jax.block_until_ready(out_seq)
    h_last = jax.block_until_ready(h_last)

    def _scan_step(h_c, x_t):
        h_n = _reference_gru_cell(x_t, h_c, w_ih, w_hh, b_ih, b_hh)
        return h_n, h_n
    h_ref_last, out_ref_seq = jax.lax.scan(_scan_step,
                                           hid_word_dec.reshape(batch, d_hid),
                                           jnp.swapaxes(tgt_seq, 0, 1))
    out_ref_seq = jnp.swapaxes(out_ref_seq, 0, 1)

    assert out_seq.shape == (batch, T, d_hid)
    assert h_last.shape == (1, batch, d_hid)
    assert jnp.allclose(out_seq, out_ref_seq, atol=2e-2, rtol=2e-2), (
        float(jnp.max(jnp.abs(out_seq - out_ref_seq))))
    assert jnp.allclose(h_last.reshape(batch, d_hid), h_ref_last,
                        atol=2e-2, rtol=2e-2)

    print("KERNEL_OK")
</pallas_src>

<mosaic_0001>
module attributes {stable_mosaic.version = 11 : i64} {
  func.func @_gru_step_kernel(%arg0: memref<8x128xf32, #tpu.memory_space<vmem>>, %arg1: memref<8x128xf32, #tpu.memory_space<vmem>>, %arg2: memref<128x384xbf16, #tpu.memory_space<vmem>>, %arg3: memref<128x384xbf16, #tpu.memory_space<vmem>>, %arg4: memref<1x384xf32, #tpu.memory_space<vmem>>, %arg5: memref<1x128xf32, #tpu.memory_space<vmem>>, %arg6: memref<8x128xf32, #tpu.memory_space<vmem>>) attributes {dimension_semantics = [], scalar_prefetch = 0 : i64, scratch_operands = 0 : i64, tpu.core_type = #tpu.core_type<tc>} {
    %c0 = arith.constant 0 : index
    %c0_0 = arith.constant 0 : index
    %0 = vector.load %arg1[%c0, %c0_0] : memref<8x128xf32, #tpu.memory_space<vmem>>, vector<8x128xf32>
    %c0_1 = arith.constant 0 : index
    %c0_2 = arith.constant 0 : index
    %1 = vector.load %arg0[%c0_1, %c0_2] : memref<8x128xf32, #tpu.memory_space<vmem>>, vector<8x128xf32>
    %2 = arith.truncf %1 : vector<8x128xf32> to vector<8x128xbf16>
    %c0_3 = arith.constant 0 : index
    %c0_4 = arith.constant 0 : index
    %3 = vector.load %arg2[%c0_3, %c0_4] : memref<128x384xbf16, #tpu.memory_space<vmem>>, vector<128x384xbf16>
    %cst = arith.constant dense<0.000000e+00> : vector<8x384xf32>
    %4 = tpu.matmul %2, %3, %cst {dimension_numbers = #tpu.dot_dimension_numbers<[1], [0], [0], [1], [0, 0, 1, 1], [], []>} : vector<8x128xbf16>, vector<128x384xbf16>, vector<8x384xf32> -> vector<8x384xf32>
    %5 = arith.truncf %0 : vector<8x128xf32> to vector<8x128xbf16>
    %c0_5 = arith.constant 0 : index
    %c0_6 = arith.constant 0 : index
    %6 = vector.load %arg3[%c0_5, %c0_6] : memref<128x384xbf16, #tpu.memory_space<vmem>>, vector<128x384xbf16>
    %cst_7 = arith.constant dense<0.000000e+00> : vector<8x384xf32>
    %7 = tpu.matmul %5, %6, %cst_7 {dimension_numbers = #tpu.dot_dimension_numbers<[1], [0], [0], [1], [0, 0, 1, 1], [], []>} : vector<8x128xbf16>, vector<128x384xbf16>, vector<8x384xf32> -> vector<8x384xf32>
    %8 = vector.extract_strided_slice %4 {offsets = [0, 0], sizes = [8, 128], strides = [1, 1]} : vector<8x384xf32> to vector<8x128xf32>
    %9 = vector.extract_strided_slice %7 {offsets = [0, 0], sizes = [8, 128], strides = [1, 1]} : vector<8x384xf32> to vector<8x128xf32>
    %10 = arith.addf %8, %9 : vector<8x128xf32>
    %c0_8 = arith.constant 0 : index
    %c0_9 = arith.constant 0 : index
    %11 = vector.load %arg4[%c0_8, %c0_9] : memref<1x384xf32, #tpu.memory_space<vmem>>, vector<1x128xf32>
    %12 = vector.broadcast %11 : vector<1x128xf32> to vector<8x128xf32>
    %13 = arith.addf %10, %12 : vector<8x128xf32>
    %14 = arith.negf %13 : vector<8x128xf32>
    %15 = math.exp %14 : vector<8x128xf32>
    %cst_10 = arith.constant 1.000000e+00 : f32
    %16 = vector.broadcast %cst_10 : f32 to vector<8x128xf32>
    %17 = arith.addf %16, %15 : vector<8x128xf32>
    %18 = arith.divf %16, %17 : vector<8x128xf32>
    %19 = vector.extract_strided_slice %4 {offsets = [0, 128], sizes = [8, 128], strides = [1, 1]} : vector<8x384xf32> to vector<8x128xf32>
    %20 = vector.extract_strided_slice %7 {offsets = [0, 128], sizes = [8, 128], strides = [1, 1]} : vector<8x384xf32> to vector<8x128xf32>
    %21 = arith.addf %19, %20 : vector<8x128xf32>
    %c0_11 = arith.constant 0 : index
    %c128 = arith.constant 128 : index
    %22 = vector.load %arg4[%c0_11, %c128] : memref<1x384xf32, #tpu.memory_space<vmem>>, vector<1x128xf32>
    %23 = vector.broadcast %22 : vector<1x128xf32> to vector<8x128xf32>
    %24 = arith.addf %21, %23 : vector<8x128xf32>
    %25 = arith.negf %24 : vector<8x128xf32>
    %26 = math.exp %25 : vector<8x128xf32>
    %cst_12 = arith.constant 1.000000e+00 : f32
    %27 = vector.broadcast %cst_12 : f32 to vector<8x128xf32>
    %28 = arith.addf %27, %26 : vector<8x128xf32>
    %29 = arith.divf %27, %28 : vector<8x128xf32>
    %30 = vector.extract_strided_slice %4 {offsets = [0, 256], sizes = [8, 128], strides = [1, 1]} : vector<8x384xf32> to vector<8x128xf32>
    %c0_13 = arith.constant 0 : index
    %c256 = arith.constant 256 : index
    %31 = vector.load %arg4[%c0_13, %c256] : memref<1x384xf32, #tpu.memory_space<vmem>>, vector<1x128xf32>
    %32 = vector.broadcast %31 : vector<1x128xf32> to vector<8x128xf32>
    %33 = arith.addf %30, %32 : vector<8x128xf32>
    %34 = vector.extract_strided_slice %7 {offsets = [0, 256], sizes = [8, 128], strides = [1, 1]} : vector<8x384xf32> to vector<8x128xf32>
    %c0_14 = arith.constant 0 : index
    %c0_15 = arith.constant 0 : index
    %35 = vector.load %arg5[%c0_14, %c0_15] : memref<1x128xf32, #tpu.memory_space<vmem>>, vector<1x128xf32>
    %36 = vector.broadcast %35 : vector<1x128xf32> to vector<8x128xf32>
    %37 = arith.addf %34, %36 : vector<8x128xf32>
    %38 = arith.mulf %18, %37 : vector<8x128xf32>
    %39 = arith.addf %33, %38 : vector<8x128xf32>
    %40 = math.tanh %39 : vector<8x128xf32>
    %41 = arith.subf %0, %40 : vector<8x128xf32>
    %42 = arith.mulf %29, %41 : vector<8x128xf32>
    %43 = arith.addf %40, %42 : vector<8x128xf32>
    %c0_16 = arith.constant 0 : index
    %c0_17 = arith.constant 0 : index
    %44 = vector.load %arg6[%c0_16, %c0_17] : memref<8x128xf32, #tpu.memory_space<vmem>>, vector<8x128xf32>
    tpu.vector_store %arg6[%c0_16, %c0_17], %43 {strides = array<i32>} : memref<8x128xf32, #tpu.memory_space<vmem>>, vector<8x128xf32>,
    return
  }
}

</mosaic_0001>

<bundles_post_ra>
// kernel: tpu_custom_call.1
= control target key start
LH: loop header
LB: loop body
LE: loop exit
PB: predicated region body
PF: predicated region fallthrough
CT: control target
= control target key end

     0   :  { %11 = vsyncpa [#allocation3], 0  ;;  %s993_s0 = inlined_call_operand.vmem [shape: f32[8,128], index: 0, kind: input, shape index: {}]   ;;  %s994_s1 = inlined_call_operand.hbm [shape: f32[8,128], index: 1, kind: input, shape index: {}, may-alias: {1,6}]   ;;  %s995_s2 = inlined_call_operand.hbm [shape: bf16[128,384], index: 2, kind: input, shape index: {}]   ;;  %s996_s3 = inlined_call_operand.hbm [shape: bf16[128,384], index: 3, kind: input, shape index: {}]   ;;  %s997_s4 = inlined_call_operand.vmem [shape: f32[1,384], index: 4, kind: input, shape index: {}]   ;;  %s998_s5 = inlined_call_operand.vmem [shape: f32[1,128], index: 5, kind: input, shape index: {}]   ;;  %s999_s6 = inlined_call_operand.hbm [shape: f32[8,128], index: 6, kind: output, shape index: {}, may-alias: {1,6}]  }
   0x1   :  { %12 = vsyncpa [#allocation6], 0 }
   0x2   :  { %13 = vsyncpa [#allocation4], 0  ;;  %s900_s21 = smov [#allocation5]  }
   0x3   :  { %s31_s22 = sshll.u32 %s900_s21, 4  ;;  %s32_s22 = int_to_ptr.vmem [resolvable:$true] %s31_s22 }
   0x4   :  { %s822_s23 = scalar_lea.vmem %s32_s22, 3072  ;;  %p827_p1 = scmp.lt.s32.totalorder %s32_s22, %s32_s22 }
   0x5   :  { %p823_p0 = scmp.ne.s32.totalorder %s32_s22, %s822_s23  ;;  %p828_p2 = scmp.lt.s32.totalorder %s822_s23, %s822_s23 }
   0x7   :  { %p829_p3 = por %p828_p2, %p827_p1 }
   0x9   :  { %p830_p4 = pnand %p829_p3, %p823_p0 }
   0xb   :  { %833 = shalt.err (!%p830_p4)
}
   0xc   :  { %s901_s24 = smov 192   ;;  %s902_s25 = smov 12  }
   0xd   :  { %37 = dma.hbm_to_vmem [thread:$0]  %s995_s2, 3072, %s32_s22, [#allocation6], %s901_s24, %s901_s24, %s902_s25  }
   0xe   :  { %s903_s28 = smov [#allocation2]   ;;  %s904_s30 = smov [#allocation7]  }
   0xf   :  { %s22_s29 = sshll.u32 %s903_s28, 4  ;;  %s43_s7 = sshll.u32 %s904_s30, 4  ;;  %s23_s29 = int_to_ptr.vmem [resolvable:$true] %s22_s29  ;;  %s44_s7 = int_to_ptr.vmem [resolvable:$true] %s43_s7 }
  0x10   :  { %s842_s8 = scalar_lea.vmem %s23_s29, 128  ;;  %p847_p6 = scmp.lt.s32.totalorder %s23_s29, %s23_s29 }
  0x11   :  { %p843_p5 = scmp.ne.s32.totalorder %s23_s29, %s842_s8  ;;  %p848_p7 = scmp.lt.s32.totalorder %s842_s8, %s842_s8 }
  0x13   :  { %p849_p8 = por %p848_p7, %p847_p6 }
  0x15   :  { %p850_p9 = pnand %p849_p8, %p843_p5 }
  0x17   :  { %853 = shalt.err (!%p850_p9)
}
  0x18   :  { %25 = dma.hbm_to_vmem [thread:$0]  %s994_s1, 128, %s23_s29, [#allocation3]  }
  0x19   :  { %s862_s11 = scalar_lea.vmem %s44_s7, 3072  ;;  %p867_p11 = scmp.lt.s32.totalorder %s44_s7, %s44_s7 }
  0x1a   :  { %p863_p10 = scmp.ne.s32.totalorder %s44_s7, %s862_s11  ;;  %p868_p12 = scmp.lt.s32.totalorder %s862_s11, %s862_s11 }
  0x1c   :  { %p869_p13 = por %p868_p12, %p867_p11 }
  0x1e   :  { %p870_p0 = pnand %p869_p13, %p863_p10 }
  0x20   :  { %873 = shalt.err (!%p870_p0)
}
  0x21   :  { %49 = dma.hbm_to_vmem [thread:$0]  %s996_s3, 3072, %s44_s7, [#allocation6], %s901_s24, %s901_s24, %s902_s25  }
  0x22   :  { %894 = dma.done.wait [#allocation3], 128  }
  0x23   :  { %895 = vsyncadd [#allocation3], 4294967168 }
  0x24   :  { %896 = dma.done.wait [#allocation6], 6144  }
  0x25   :  { %897 = vsyncadd [#allocation6], 4294961152  ;;  %v905_v0 = vmov 0.0   ;;  %v906_v1 = vmov 0   ;;  %vm907_vm0 = vmmov 0   ;;  %v65_v23 = vld [vmem:[%s993_s0] sm:$0xff] }
  0x26   :  { %691 = vmatprep.subr.bf16.mxu1 %v905_v0  ;;  %259 = vmatprep.mubr.bf16.mxu0 %v906_v1  ;;  %v740_v2 = vld [vmem:[#allocation5 + $0xac] ss:$12 sps:$4 sm:$0xff]   ;;  %v742_v3 = vld [vmem:[#allocation5 + $0xa8] ss:$12 sps:$4 sm:$0xff]   ;;  %v745_v5 = vld [vmem:[#allocation5 + $0x90] ss:$12 sps:$4 sm:$0xff]   ;;  %v66_v26 = vpack.c.bf16 %v65_v23, %v65_v23 }
  0x27   :  { %707 = vmatprep.mubr.msk.bf16.mxu1 %vm907_vm0, %v905_v0  ;;  %227 = vmatprep.subr.bf16.mxu0 %v740_v2  ;;  %v743_v4 = vld [vmem:[#allocation5 + $0x94] ss:$12 sps:$4 sm:$0xff]   ;;  %v746_v6 = vld [vmem:[#allocation5 + $0x7c] ss:$12 sps:$4 sm:$0xff]   ;;  %v748_v7 = vld [vmem:[#allocation5 + $0x78] ss:$12 sps:$4 sm:$0xff]  }
  0x28   :  { %228 = vmatpush1.bf16.msra.mxu0 %v742_v3  ;;  %v749_v8 = vld [vmem:[#allocation5 + $0x64] ss:$12 sps:$4 sm:$0xff]   ;;  %v751_v9 = vld [vmem:[#allocation5 + $0x60] ss:$12 sps:$4 sm:$0xff]   ;;  %v754_v13 = vld [vmem:[#allocation5 + $0x48] ss:$12 sps:$4 sm:$0xff]  }
  0x29   :  { %229 = vmatprep.subr.bf16.mxu0 %v743_v4  ;;  %v764_v10 = vld [vmem:[#allocation5 + $0xb0] ss:$12 sps:$4 sm:$0xff]   ;;  %v752_v11 = vld [vmem:[#allocation5 + $0x4c] ss:$12 sps:$4 sm:$0xff]   ;;  %v755_v14 = vld [vmem:[#allocation5 + $0x34] ss:$12 sps:$4 sm:$0xff]  }
  0x2a   :  { %692 = vmatpush3.bf16.msra.mxu1 %v764_v10  ;;  %v768_v12 = vld [vmem:[#allocation5 + $0x98] ss:$12 sps:$4 sm:$0xff]   ;;  %v772_v15 = vld [vmem:[#allocation5 + $0x80] ss:$12 sps:$4 sm:$0xff]   ;;  %v757_v16 = vld [vmem:[#allocation5 + $0x30] ss:$12 sps:$4 sm:$0xff]  }
  0x2b   :  { %693 = vmatprep.subr.bf16.mxu1 %v905_v0  ;;  %v758_v17 = vld [vmem:[#allocation5 + $0x1c] ss:$12 sps:$4 sm:$0xff]   ;;  %v760_v19 = vld [vmem:[#allocation5 + $0x18] ss:$12 sps:$4 sm:$0xff]   ;;  %v763_v22 = vld [vmem:[#allocation5] ss:$12 sps:$4 sm:$0xff]  }
  0x2c   :  { %230 = vmatpush1.bf16.msra.mxu0 %v745_v5  ;;  %v776_v18 = vld [vmem:[#allocation5 + $0x68] ss:$12 sps:$4 sm:$0xff]   ;;  %v761_v20 = vld [vmem:[#allocation5 + $0x4] ss:$12 sps:$4 sm:$0xff]   ;;  %v767_v24 = vld [vmem:[#allocation7 + $0xac] ss:$12 sps:$4 sm:$0xff]  }
  0x2d   :  { %231 = vmatprep.subr.bf16.mxu0 %v746_v6  ;;  %v780_v21 = vld [vmem:[#allocation5 + $0x50] ss:$12 sps:$4 sm:$0xff]   ;;  %v784_v25 = vld [vmem:[#allocation5 + $0x38] ss:$12 sps:$4 sm:$0xff]   ;;  %v765_v27 = vld [vmem:[#allocation7 + $0xa8] ss:$12 sps:$4 sm:$0xff]  }
  0x2e   :  { %694 = vmatpush3.bf16.msra.mxu1 %v768_v12  ;;  %v771_v28 = vld [vmem:[#allocation7 + $0x94] ss:$12 sps:$4 sm:$0xff]   ;;  %v769_v30 = vld [vmem:[#allocation7 + $0x90] ss:$12 sps:$4 sm:$0xff]   ;;  %v773_v33 = vld [vmem:[#allocation7 + $0x78] ss:$12 sps:$4 sm:$0xff]  }
  0x2f   :  { %695 = vmatprep.subr.bf16.mxu1 %v905_v0  ;;  %v788_v29 = vld [vmem:[#allocation5 + $0x20] ss:$12 sps:$4 sm:$0xff]   ;;  %v775_v31 = vld [vmem:[#allocation7 + $0x7c] ss:$12 sps:$4 sm:$0xff]   ;;  %v779_v34 = vld [vmem:[#allocation7 + $0x64] ss:$12 sps:$4 sm:$0xff]  }
  0x30   :  { %232 = vmatpush1.bf16.msra.mxu0 %v748_v7  ;;  %v792_v32 = vld [vmem:[#allocation5 + $0x8] ss:$12 sps:$4 sm:$0xff]   ;;  %v796_v35 = vld [vmem:[#allocation7 + $0xb0] ss:$12 sps:$4 sm:$0xff]   ;;  %v777_v36 = vld [vmem:[#allocation7 + $0x60] ss:$12 sps:$4 sm:$0xff]  }
  0x31   :  { %233 = vmatprep.subr.bf16.mxu0 %v749_v8  ;;  %v783_v37 = vld [vmem:[#allocation7 + $0x4c] ss:$12 sps:$4 sm:$0xff]   ;;  %v781_v39 = vld [vmem:[#allocation7 + $0x48] ss:$12 sps:$4 sm:$0xff]   ;;  %v785_v42 = vld [vmem:[#allocation7 + $0x30] ss:$12 sps:$4 sm:$0xff]  }
  0x32   :  { %696 = vmatpush3.bf16.msra.mxu1 %v772_v15  ;;  %v797_v38 = vld [vmem:[#allocation7 + $0x98] ss:$12 sps:$4 sm:$0xff]   ;;  %v787_v40 = vld [vmem:[#allocation7 + $0x34] ss:$12 sps:$4 sm:$0xff]   ;;  %v791_v43 = vld [vmem:[#allocation7 + $0x1c] ss:$12 sps:$4 sm:$0xff]  }
  0x33   :  { %697 = vmatprep.subr.bf16.mxu1 %v905_v0  ;;  %v798_v41 = vld [vmem:[#allocation7 + $0x80] ss:$12 sps:$4 sm:$0xff]   ;;  %v799_v44 = vld [vmem:[#allocation7 + $0x68] ss:$12 sps:$4 sm:$0xff]   ;;  %v789_v45 = vld [vmem:[#allocation7 + $0x18] ss:$12 sps:$4 sm:$0xff]  }
  0x34   :  { %234 = vmatpush1.bf16.msra.mxu0 %v751_v9  ;;  %v795_v46 = vld [vmem:[#allocation7 + $0x4] ss:$12 sps:$4 sm:$0xff]   ;;  %v793_v48 = vld [vmem:[#allocation7] ss:$12 sps:$4 sm:$0xff]   ;;  %v64_v49 = vld [vmem:[#allocation2] sm:$0xff]  ;;  %s908_s20 = smov [#allocation8]  }
  0x35   :  { %235 = vmatprep.subr.bf16.mxu0 %v752_v11  ;;  %v800_v47 = vld [vmem:[#allocation7 + $0x50] ss:$12 sps:$4 sm:$0xff]   ;;  %v801_v50 = vld [vmem:[#allocation7 + $0x38] ss:$12 sps:$4 sm:$0xff]   ;;  %v308_v51 = vpack.c.bf16 %v64_v49, %v64_v49  ;;  %v802_v52 = vld [vmem:[#allocation7 + $0x20] ss:$12 sps:$4 sm:$0xff]  }
  0x36   :  { %698 = vmatpush3.bf16.msra.mxu1 %v776_v18  ;;  %v803_v53 = vld [vmem:[#allocation7 + $0x8] ss:$12 sps:$4 sm:$0xff]   ;;  %v667_v63 = vld [vmem:[%s997_s4] ss:$0 sm:$0xff]  ;;  %v669_v8 = vld [vmem:[%s997_s4 + $0x1] ss:$0 sm:$0xff] }
  0x37   :  { %699 = vmatprep.subr.bf16.mxu1 %v905_v0  ;;  %v671_v18 = vld [vmem:[%s997_s4 + $0x2] ss:$0 sm:$0xff]  ;;  %s609_s21 = sshll.u32 %s908_s20, 4  ;;  %s610_s21 = int_to_ptr.vmem [resolvable:$true] %s609_s21 }
  0x38   :  { %236 = vmatpush1.bf16.msra.mxu0 %v754_v13  ;;  %p879_p2 = scmp.lt.s32.totalorder %s610_s21, %s610_s21 }
  0x39   :  { %237 = vmatprep.subr.bf16.mxu0 %v755_v14 }
  0x3a   :  { %700 = vmatpush3.bf16.msra.mxu1 %v780_v21 }
  0x3b   :  { %701 = vmatprep.subr.bf16.mxu1 %v905_v0 }
  0x3c   :  { %238 = vmatpush1.bf16.msra.mxu0 %v757_v16  ;;  %v672_v16 = vld [vmem:[%s998_s5] ss:$0 sm:$0xff]  ;;  %s874_s5 = scalar_lea.vmem %s610_s21, 128 }
  0x3d   :  { %239 = vmatprep.subr.bf16.mxu0 %v758_v17  ;;  %p875_p1 = scmp.ne.s32.totalorder %s610_s21, %s874_s5  ;;  %p880_p3 = scmp.lt.s32.totalorder %s874_s5, %s874_s5 }
  0x3e   :  { %702 = vmatpush3.bf16.msra.mxu1 %v784_v25 }
  0x3f   :  { %703 = vmatprep.subr.bf16.mxu1 %v905_v0  ;;  %p881_p4 = por %p880_p3, %p879_p2 }
  0x40   :  { %240 = vmatpush1.bf16.msra.mxu0 %v760_v19 }
  0x41   :  { %241 = vmatprep.subr.bf16.mxu0 %v761_v20  ;;  %p882_p5 = pnand %p881_p4, %p875_p1 }
  0x42   :  { %704 = vmatpush3.bf16.msra.mxu1 %v788_v29 }
  0x43   :  { %705 = vmatprep.subr.bf16.mxu1 %v905_v0 }
  0x44   :  { %242 = vmatpush1.bf16.msra.mxu0 %v763_v22 }
  0x45   :  { %469 = vmatprep.subr.bf16.mxu0 %v767_v24 }
  0x46   :  { %706 = vmatpush3.bf16.msra.mxu1 %v792_v32 }
  0x47   :  { %260 = vmatmul.mubr.bf16.vlgmr.msra.gmra.mxu0 %v66_v26  ;;  %711 = vmatprep.subr.bf16.mxu1 %v905_v0 }
  0x48   :  { %470 = vmatpush1.bf16.msra.mxu0 %v765_v27  ;;  %501 = vmatprep.mubr.bf16.mxu0 %v906_v1 }
  0x49   :  { %471 = vmatprep.subr.bf16.mxu0 %v771_v28  ;;  %708 = vmatmul.mubr.bf16.vlgmr.msra.gmra.mxu1 %v66_v26 }
  0x4a   :  { %712 = vmatpush3.bf16.msra.mxu1 %v796_v35  ;;  %727 = vmatprep.mubr.msk.bf16.mxu1 %vm907_vm0, %v905_v0 }
  0x4b   :  { %713 = vmatprep.subr.bf16.mxu1 %v905_v0 }
  0x4c   :  { %472 = vmatpush1.bf16.msra.mxu0 %v769_v30 }
  0x4d   :  { %473 = vmatprep.subr.bf16.mxu0 %v775_v31 }
  0x4e   :  { %714 = vmatpush3.bf16.msra.mxu1 %v797_v38 }
  0x4f   :  { %715 = vmatprep.subr.bf16.mxu1 %v905_v0 }
  0x50   :  { %474 = vmatpush1.bf16.msra.mxu0 %v773_v33 }
  0x51   :  { %475 = vmatprep.subr.bf16.mxu0 %v779_v34 }
  0x52   :  { %716 = vmatpush3.bf16.msra.mxu1 %v798_v41 }
  0x53   :  { %717 = vmatprep.subr.bf16.mxu1 %v905_v0 }
  0x54   :  { %476 = vmatpush1.bf16.msra.mxu0 %v777_v36 }
  0x55   :  { %477 = vmatprep.subr.bf16.mxu0 %v783_v37 }
  0x56   :  { %718 = vmatpush3.bf16.msra.mxu1 %v799_v44 }
  0x57   :  { %719 = vmatprep.subr.bf16.mxu1 %v905_v0 }
  0x58   :  { %478 = vmatpush1.bf16.msra.mxu0 %v781_v39 }
  0x59   :  { %479 = vmatprep.subr.bf16.mxu0 %v787_v40 }
  0x5a   :  { %720 = vmatpush3.bf16.msra.mxu1 %v800_v47 }
  0x5b   :  { %721 = vmatprep.subr.bf16.mxu1 %v905_v0 }
  0x5c   :  { %480 = vmatpush1.bf16.msra.mxu0 %v785_v42 }
  0x5d   :  { %481 = vmatprep.subr.bf16.mxu0 %v791_v43 }
  0x5e   :  { %722 = vmatpush3.bf16.msra.mxu1 %v801_v50 }
  0x5f   :  { %723 = vmatprep.subr.bf16.mxu1 %v905_v0 }
  0x60   :  { %482 = vmatpush1.bf16.msra.mxu0 %v789_v45 }
  0x61   :  { %483 = vmatprep.subr.bf16.mxu0 %v795_v46 }
  0x62   :  { %724 = vmatpush3.bf16.msra.mxu1 %v802_v52 }
  0x63   :  { %725 = vmatprep.subr.bf16.mxu1 %v905_v0 }
  0x64   :  { %484 = vmatpush1.bf16.msra.mxu0 %v793_v48 }
  0x66   :  { %726 = vmatpush3.bf16.msra.mxu1 %v803_v53 }
  0x67   :  { %502 = vmatmul.mubr.bf16.vlgmr.msra.gmra.mxu0 %v308_v51 }
  0x69   :  { %728 = vmatmul.mubr.bf16.vlgmr.msra.gmra.mxu1 %v308_v51 }
 0x107   :  { %v261_v54 = vpop.f32.mrf.mxu0 }
 0x109   :  { %v263_v55 = vpop.f32.mrf.mxu0  ;;  %v302_v58 = vpop.f32.mrf.mxu1 }
 0x10a   :  { %v587_v21 = vadd.f32 %v671_v18, %v302_v58 }
 0x10b   :  { %v265_v56 = vpop.f32.mrf.mxu0  ;;  %v709_v59 = vpop.f32.mrf.mxu1 }
 0x10d   :  { %v266_v57 = vpop.f32.mrf.mxu0  ;;  %v305_v60 = vpop.f32.mrf.mxu1 }
 0x10f   :  { %v710_v61 = vpop.f32.mrf.mxu1 }
 0x127   :  { %v503_v62 = vpop.f32.mrf.mxu0 }
 0x128   :  { %v550_v1 = vadd.f32 %v503_v62, %v261_v54 }
 0x129   :  { %v505_v2 = vpop.f32.mrf.mxu0  ;;  %v544_v7 = vpop.f32.mrf.mxu1 }
 0x12a   :  { %v558_v3 = vadd.f32 %v667_v63, %v550_v1  ;;  %v565_v6 = vadd.f32 %v505_v2, %v263_v55  ;;  %v595_v17 = vadd.f32 %v672_v16, %v544_v7 }
 0x12b   :  { %v507_v4 = vpop.f32.mrf.mxu0  ;;  %v729_v9 = vpop.f32.mrf.mxu1 }
 0x12c   :  { %v668_v0 = vmul.f32 -1.442695, %v558_v3  ;;  %v573_v10 = vadd.f32 %v669_v8, %v565_v6 }
 0x12d   :  { %v508_v5 = vpop.f32.mrf.mxu0  ;;  %v547_v11 = vpop.f32.mrf.mxu1 }
 0x12e   :  { %804 = vpow2.f32 %v668_v0  ;;  %v670_v13 = vmul.f32 -1.442695, %v573_v10 }
 0x12f   :  { %v730_v12 = vpop.f32.mrf.mxu1 }
 0x130   :  { %806 = vpow2.f32 %v670_v13 }
 0x13b   :  { %v805_v14 = vpop.eup %804 }
 0x13c   :  { %v562_v15 = vadd.f32 1.0, %v805_v14 }
 0x13d   :  { %v807_v19 = vpop.eup %806 }
 0x13e   :  { %808 = vrcp.f32 %v562_v15  ;;  %v577_v23 = vadd.f32 1.0, %v807_v19 }
 0x14b   :  { %v809_v20 = vpop.eup %808 }
 0x14c   :  { %v596_v22 = vmul.f32 %v809_v20, %v595_v17 }
 0x14e   :  { %v597_v24 = vadd.f32 %v596_v22, %v587_v21 }
 0x150   :  { %810 = vtanh.f32 %v597_v24 }
 0x151   :  { %812 = vrcp.f32 %v577_v23 }
 0x15d   :  { %v811_v25 = vpop.eup %810 }
 0x15e   :  { %v599_v26 = vsub.f32 %v64_v49, %v811_v25  ;;  %v813_v27 = vpop.eup %812 }
 0x160   :  { %v600_v28 = vmul.f32 %v813_v27, %v599_v26 }
 0x162   :  { %v601_v29 = vadd.f32 %v811_v25, %v600_v28 }
 0x164   :  { %602 = vst [vmem:[#allocation8] sm:$0xff] %v601_v29 }
 0x165   :  { %885 = shalt.err (!%p882_p5)
}
 0x166   :  { %612 = dma.vmem_to_hbm [thread:$0]  %s610_s21, 128, %s999_s6, [#allocation4]  }
 0x167   :  { %898 = dma.done.wait [#allocation4], 128  }
 0x168   :  { %899 = vsyncadd [#allocation4], 4294967168 }
 0x169   :  { %616 = vsyncpa [#allocation3], 1 }
 0x16a   :  { %617 = vsyncpa [#allocation6], 1 }
 0x16b   :  { %618 = vsyncpa [#allocation4], 1 }

</bundles_post_ra>
